<compile_context>
chip_gen: v5e
topology: v5e:2x2
jax: 0.10.0
libtpu: 0.0.40
codegen_flags: <defaults>
</compile_context>

<pallas_src>
import functools

import jax
import jax.numpy as jnp
from jax import lax
from jax.experimental import pallas as pl
from jax.experimental.pallas import tpu as pltpu


def _round_up(x, m):
    return ((x + m - 1) // m) * m


def _fused_convt_bn_relu_kernel(xq_ref, wt_ref, mask_ref, gamma_ref, beta_ref, o_ref, *,
                                cout, wp, m_out, count, eps):
    """Fused sub-pixel ConvTranspose2d(4,2,0) + BatchNorm2d (batch stats) + ReLU.

    xq_ref    : (Cin, Lq)        flattened zero-padded input (channels on sublanes)
    wt_ref    : (4*Cout, 4*Cin)  phase-stacked, flipped conv-transpose weights
    mask_ref  : (1, M)           1.0 on real output columns, 0.0 on junk/pad columns
    gamma_ref : (Cout, 1)
    beta_ref  : (Cout, 1)
    o_ref     : (4*Cout, M)      BN+ReLU output, phase-major rows, lane-dense columns
    """
    # --- in-kernel im2col: 4 lane-shifted views of the flattened padded input.
    # (j, l) shift -> column offset j*Wp + l; stacked on the contraction axis.
    offs = (0, 1, wp, wp + 1)
    pt = jnp.concatenate([xq_ref[:, pl.ds(off, m_out)] for off in offs], axis=0)  # (4*Cin, M)

    # --- the whole transposed conv as a single MXU matmul (f32 accumulation) ---
    y = jnp.dot(wt_ref[...], pt, preferred_element_type=jnp.float32)              # (4*Cout, M)

    mask = mask_ref[...]                                                           # (1, M)
    inv_count = 1.0 / count

    # --- per-channel mean over real columns, folding the 4 output phases ---
    rsum4 = jnp.sum(y * mask, axis=1, keepdims=True)                               # (4*Cout, 1)
    mean = (rsum4[0 * cout:1 * cout] + rsum4[1 * cout:2 * cout] +
            rsum4[2 * cout:3 * cout] + rsum4[3 * cout:4 * cout]) * inv_count       # (Cout, 1)
    mean4 = jnp.concatenate([mean, mean, mean, mean], axis=0)                      # (4*Cout, 1)

    # --- biased variance, two-pass (masked; `count` stays the real N*Ho*Wo) ---
    d = y - mean4
    css4 = jnp.sum(d * d * mask, axis=1, keepdims=True)                            # (4*Cout, 1)
    # NOTE: at production M these two reductions can be offloaded to the otherwise
    # idle MXU as y @ mask_col / (d*d) @ mask_col to unload the XLUs.
    var = (css4[0 * cout:1 * cout] + css4[1 * cout:2 * cout] +
           css4[2 * cout:3 * cout] + css4[3 * cout:4 * cout]) * inv_count          # (Cout, 1)

    # --- fused BN affine + ReLU: one lane-dense, full-slab store ---
    scale = gamma_ref[...] * lax.rsqrt(var + eps)                                  # (Cout, 1)
    scale4 = jnp.concatenate([scale, scale, scale, scale], axis=0)                 # (4*Cout, 1)
    beta4 = jnp.concatenate([beta_ref[...]] * 4, axis=0)                           # (4*Cout, 1)
    o_ref[...] = jnp.maximum(d * scale4 + beta4, 0.0)


def ck_block_transpose_forward(x, weight, gamma, beta, *, kernel_size=4, stride=2,
                               padding=0, eps=1e-5, matmul_dtype=jnp.bfloat16):
    """x: (N, Cin, H, W) float32 (NCHW, like PyTorch). Returns (N, Cout, Ho, Wo).

    Sub-pixel decomposition specialized to the module defaults (k=4, s=2, p=0):
    the transposed conv splits into 4 stride-1 2x2 convs over the UNdilated input,
    one per output phase (oh%2, ow%2); the 75%-zero dilated intermediate is never built.
    """
    assert kernel_size == 4 and stride == 2 and padding == 0
    N, Cin, H, W = x.shape
    Cout = weight.shape[1]
    Ho = (H - 1) * stride - 2 * padding + kernel_size          # = 2H + 2
    Wo = (W - 1) * stride - 2 * padding + kernel_size          # = 2W + 2
    Hh, Ww = Ho // 2, Wo // 2                                  # per-phase extent (H+1, W+1)
    Wp = W + 2                                                 # padded input row width
    Sp = (H + 2) * Wp                                          # per-batch flat input stride
    M = _round_up(N * Sp, 128)                                 # lane-dense output columns
    Lq = _round_up(M + Wp + 2, 128)                            # flat input length (shift guard + 0 tail)

    x32 = x.astype(jnp.float32)
    w32 = weight.astype(jnp.float32)

    # --- glue (one fused pad+transpose+cast copy): flattened padded input, channels on rows ---
    xp = jnp.pad(x32, ((0, 0), (0, 0), (1, 1), (1, 1)))                      # (N, Cin, H+2, W+2)
    xq = jnp.transpose(xp, (1, 0, 2, 3)).reshape(Cin, N * Sp)                # (Cin, N*Sp)
    xq = jnp.pad(xq, ((0, 0), (0, Lq - N * Sp))).astype(matmul_dtype)        # (Cin, Lq)

    # --- glue: phase-stacked flipped weights (tiny) ---
    # y[n, co, 2a+ph, 2b+pw] = sum_{j,l,ci} xpad[n,ci,a+j,b+l] * W[ci,co,ph+2-2j,pw+2-2l]
    rows = []
    for ph in range(2):
        for pw in range(2):
            blk = [w32[:, :, ph + 2 - 2 * j, pw + 2 - 2 * l].T               # (Cout, Cin)
                   for j in range(2) for l in range(2)]
            rows.append(jnp.concatenate(blk, axis=1))                        # (Cout, 4*Cin)
    wt = jnp.concatenate(rows, axis=0).astype(matmul_dtype)                  # (4*Cout, 4*Cin)

    # --- glue: mask of real output columns (a < Hh, b < Ww, within the N batches) ---
    midx = jnp.arange(M, dtype=jnp.int32)
    local = midx % Sp
    mask = ((midx < N * Sp) & (local // Wp < Hh) & (local % Wp < Ww))
    mask = mask.astype(jnp.float32).reshape(1, M)

    g2 = gamma.astype(jnp.float32).reshape(Cout, 1)
    b2 = beta.astype(jnp.float32).reshape(Cout, 1)

    kern = functools.partial(_fused_convt_bn_relu_kernel, cout=Cout, wp=Wp, m_out=M,
                             count=float(N * Ho * Wo), eps=eps)

    # Single fused invocation: input slab + conv output + stats all resident in VMEM here.
    o = pl.pallas_call(
        kern,
        out_shape=jax.ShapeDtypeStruct((4 * Cout, M), jnp.float32),
        grid=(1,),
        in_specs=[pl.BlockSpec((Cin, Lq), lambda i: (0, 0)),
                  pl.BlockSpec((4 * Cout, 4 * Cin), lambda i: (0, 0)),
                  pl.BlockSpec((1, M), lambda i: (0, 0)),
                  pl.BlockSpec((Cout, 1), lambda i: (0, 0)),
                  pl.BlockSpec((Cout, 1), lambda i: (0, 0))],
        out_specs=pl.BlockSpec((4 * Cout, M), lambda i: (0, 0)),
        compiler_params=pltpu.CompilerParams(dimension_semantics=("arbitrary",)),
    )(xq, wt, mask, g2, b2)

    # TODO(synk): running_mean / running_var buffer updates of nn.BatchNorm2d are not
    # materialized (they do not affect the forward output).

    # --- glue: drop junk columns and interleave phases back into NCHW (one fused copy) ---
    o = o[:, :N * Sp].reshape(2, 2, Cout, N, H + 2, Wp)[:, :, :, :, :Hh, :Ww]
    o = jnp.transpose(o, (3, 2, 4, 0, 5, 1))                                 # (n, co, a, ph, b, pw)
    return o.reshape(N, Cout, Ho, Wo)


def _reference(x, weight, gamma, beta, *, kernel_size, stride, padding, eps=1e-5):
    """Pure-JAX reference (XLA) replicating the PyTorch module in training mode."""
    K = kernel_size
    w_conv = jnp.transpose(weight, (1, 0, 2, 3))[:, :, ::-1, ::-1]           # (Cout, Cin, K, K)
    y = lax.conv_general_dilated(
        x, w_conv, window_strides=(1, 1),
        padding=[(K - 1 - padding, K - 1 - padding)] * 2,
        lhs_dilation=(stride, stride),
        dimension_numbers=("NCHW", "OIHW", "NCHW"))
    mean = y.mean(axis=(0, 2, 3), keepdims=True)
    var = y.var(axis=(0, 2, 3), keepdims=True)                               # biased, as BN uses
    yhat = (y - mean) * lax.rsqrt(var + eps)
    return jnp.maximum(yhat * gamma[None, :, None, None] + beta[None, :, None, None], 0.0)


if __name__ == "__main__":
    key = jax.random.PRNGKey(0)
    kx, kw, kg, kb = jax.random.split(key, 4)

    # small, module-consistent shapes
    N, Cin, H, W = 2, 4, 16, 16
    Cout, K, stride, padding = 8, 4, 2, 0                                    # output spatial: 34x34

    x = jax.random.normal(kx, (N, Cin, H, W), dtype=jnp.float32)
    # PyTorch ConvTranspose2d weight shape: (Cin, Cout, K, K); bias=False
    weight = 0.1 * jax.random.normal(kw, (Cin, Cout, K, K), dtype=jnp.float32)
    gamma = 1.0 + 0.1 * jax.random.normal(kg, (Cout,), dtype=jnp.float32)
    beta = 0.1 * jax.random.normal(kb, (Cout,), dtype=jnp.float32)

    ref = _reference(x, weight, gamma, beta, kernel_size=K, stride=stride, padding=padding)

    # default path: bf16 MXU operands, f32 accumulation
    out = ck_block_transpose_forward(x, weight, gamma, beta,
                                     kernel_size=K, stride=stride, padding=padding)
    out = jax.block_until_ready(out)
    assert out.shape == (N, Cout, (H - 1) * stride + K, (W - 1) * stride + K), out.shape
    err_bf16 = float(jnp.max(jnp.abs(out - ref)))
    assert jnp.allclose(out, ref, rtol=5e-2, atol=5e-2), err_bf16

    # f32 operand path: algorithmically exact vs. the XLA reference
    out32 = ck_block_transpose_forward(x, weight, gamma, beta,
                                       kernel_size=K, stride=stride, padding=padding,
                                       matmul_dtype=jnp.float32)
    out32 = jax.block_until_ready(out32)
    err_f32 = float(jnp.max(jnp.abs(out32 - ref)))
    assert jnp.allclose(out32, ref, rtol=1e-3, atol=5e-4), err_f32

    print("KERNEL_OK")
</pallas_src>

<mosaic_0001>
module attributes {stable_mosaic.version = 11 : i64} {
  func.func @_fused_convt_bn_relu_kernel(%arg0: i32, %arg1: memref<4x896xbf16, #tpu.memory_space<vmem>>, %arg2: memref<32x16xbf16, #tpu.memory_space<vmem>>, %arg3: memref<1x768xf32, #tpu.memory_space<vmem>>, %arg4: memref<8x1xf32, #tpu.memory_space<vmem>>, %arg5: memref<8x1xf32, #tpu.memory_space<vmem>>, %arg6: memref<32x768xf32, #tpu.memory_space<vmem>>) attributes {dimension_semantics = [#tpu.dimension_semantics<arbitrary>], iteration_bounds = array<i64: 1>, scalar_prefetch = 0 : i64, scratch_operands = 0 : i64, tpu.core_type = #tpu.core_type<tc>, window_params = [{pipeline_mode = #tpu.pipeline_mode<synchronous>, transform_indices = @transform_0, window_bounds = array<i64: 4, 896>}, {pipeline_mode = #tpu.pipeline_mode<synchronous>, transform_indices = @transform_1, window_bounds = array<i64: 32, 16>}, {pipeline_mode = #tpu.pipeline_mode<synchronous>, transform_indices = @transform_2, window_bounds = array<i64: 1, 768>}, {pipeline_mode = #tpu.pipeline_mode<synchronous>, transform_indices = @transform_3, window_bounds = array<i64: 8, 1>}, {pipeline_mode = #tpu.pipeline_mode<synchronous>, transform_indices = @transform_4, window_bounds = array<i64: 8, 1>}, {pipeline_mode = #tpu.pipeline_mode<synchronous>, transform_indices = @transform_5, window_bounds = array<i64: 32, 768>}]} {
    %c0 = arith.constant 0 : index
    %c0_0 = arith.constant 0 : index
    %0 = vector.load %arg1[%c0, %c0_0] : memref<4x896xbf16, #tpu.memory_space<vmem>>, vector<4x768xbf16>
    %c0_1 = arith.constant 0 : index
    %c1 = arith.constant 1 : index
    %1 = vector.load %arg1[%c0_1, %c1] : memref<4x896xbf16, #tpu.memory_space<vmem>>, vector<4x768xbf16>
    %c0_2 = arith.constant 0 : index
    %c18 = arith.constant 18 : index
    %2 = vector.load %arg1[%c0_2, %c18] : memref<4x896xbf16, #tpu.memory_space<vmem>>, vector<4x768xbf16>
    %c0_3 = arith.constant 0 : index
    %c19 = arith.constant 19 : index
    %3 = vector.load %arg1[%c0_3, %c19] : memref<4x896xbf16, #tpu.memory_space<vmem>>, vector<4x768xbf16>
    %4 = tpu.concatenate %0, %1, %2, %3 in 0 : vector<4x768xbf16>, vector<4x768xbf16>, vector<4x768xbf16>, vector<4x768xbf16> -> vector<16x768xbf16>
    %c0_4 = arith.constant 0 : index
    %c0_5 = arith.constant 0 : index
    %5 = vector.load %arg2[%c0_4, %c0_5] : memref<32x16xbf16, #tpu.memory_space<vmem>>, vector<32x16xbf16>
    %cst = arith.constant dense<0.000000e+00> : vector<32x768xf32>
    %6 = tpu.matmul %5, %4, %cst {dimension_numbers = #tpu.dot_dimension_numbers<[1], [0], [0], [1], [0, 0, 1, 1], [], []>} : vector<32x16xbf16>, vector<16x768xbf16>, vector<32x768xf32> -> vector<32x768xf32>
    %c0_6 = arith.constant 0 : index
    %c0_7 = arith.constant 0 : index
    %7 = vector.load %arg3[%c0_6, %c0_7] : memref<1x768xf32, #tpu.memory_space<vmem>>, vector<1x768xf32>
    %8 = vector.broadcast %7 : vector<1x768xf32> to vector<32x768xf32>
    %9 = arith.mulf %6, %8 : vector<32x768xf32>
    %cst_8 = arith.constant dense<0.000000e+00> : vector<32xf32>
    %10 = vector.multi_reduction <add>, %9, %cst_8 [1] : vector<32x768xf32> to vector<32xf32>
    %11 = vector.shape_cast %10 : vector<32xf32> to vector<32x1xf32>
    %12 = vector.extract_strided_slice %11 {offsets = [0, 0], sizes = [8, 1], strides = [1, 1]} : vector<32x1xf32> to vector<8x1xf32>
    %13 = vector.extract_strided_slice %11 {offsets = [8, 0], sizes = [8, 1], strides = [1, 1]} : vector<32x1xf32> to vector<8x1xf32>
    %14 = arith.addf %12, %13 : vector<8x1xf32>
    %15 = vector.extract_strided_slice %11 {offsets = [16, 0], sizes = [8, 1], strides = [1, 1]} : vector<32x1xf32> to vector<8x1xf32>
    %16 = arith.addf %14, %15 : vector<8x1xf32>
    %17 = vector.extract_strided_slice %11 {offsets = [24, 0], sizes = [8, 1], strides = [1, 1]} : vector<32x1xf32> to vector<8x1xf32>
    %18 = arith.addf %16, %17 : vector<8x1xf32>
    %cst_9 = arith.constant 4.32525965E-4 : f32
    %19 = vector.broadcast %cst_9 : f32 to vector<8x1xf32>
    %20 = arith.mulf %18, %19 : vector<8x1xf32>
    %21 = tpu.concatenate %20, %20, %20, %20 in 0 : vector<8x1xf32>, vector<8x1xf32>, vector<8x1xf32>, vector<8x1xf32> -> vector<32x1xf32>
    %22 = vector.broadcast %21 : vector<32x1xf32> to vector<32x768xf32>
    %23 = arith.subf %6, %22 : vector<32x768xf32>
    %24 = arith.mulf %23, %23 : vector<32x768xf32>
    %25 = vector.broadcast %7 : vector<1x768xf32> to vector<32x768xf32>
    %26 = arith.mulf %24, %25 : vector<32x768xf32>
    %cst_10 = arith.constant dense<0.000000e+00> : vector<32xf32>
    %27 = vector.multi_reduction <add>, %26, %cst_10 [1] : vector<32x768xf32> to vector<32xf32>
    %28 = vector.shape_cast %27 : vector<32xf32> to vector<32x1xf32>
    %29 = vector.extract_strided_slice %28 {offsets = [0, 0], sizes = [8, 1], strides = [1, 1]} : vector<32x1xf32> to vector<8x1xf32>
    %30 = vector.extract_strided_slice %28 {offsets = [8, 0], sizes = [8, 1], strides = [1, 1]} : vector<32x1xf32> to vector<8x1xf32>
    %31 = arith.addf %29, %30 : vector<8x1xf32>
    %32 = vector.extract_strided_slice %28 {offsets = [16, 0], sizes = [8, 1], strides = [1, 1]} : vector<32x1xf32> to vector<8x1xf32>
    %33 = arith.addf %31, %32 : vector<8x1xf32>
    %34 = vector.extract_strided_slice %28 {offsets = [24, 0], sizes = [8, 1], strides = [1, 1]} : vector<32x1xf32> to vector<8x1xf32>
    %35 = arith.addf %33, %34 : vector<8x1xf32>
    %cst_11 = arith.constant 4.32525965E-4 : f32
    %36 = vector.broadcast %cst_11 : f32 to vector<8x1xf32>
    %37 = arith.mulf %35, %36 : vector<8x1xf32>
    %c0_12 = arith.constant 0 : index
    %c0_13 = arith.constant 0 : index
    %38 = vector.load %arg4[%c0_12, %c0_13] : memref<8x1xf32, #tpu.memory_space<vmem>>, vector<8x1xf32>
    %cst_14 = arith.constant 9.99999974E-6 : f32
    %39 = vector.broadcast %cst_14 : f32 to vector<8x1xf32>
    %40 = arith.addf %37, %39 : vector<8x1xf32>
    %41 = math.rsqrt %40 : vector<8x1xf32>
    %42 = arith.mulf %38, %41 : vector<8x1xf32>
    %43 = tpu.concatenate %42, %42, %42, %42 in 0 : vector<8x1xf32>, vector<8x1xf32>, vector<8x1xf32>, vector<8x1xf32> -> vector<32x1xf32>
    %c0_15 = arith.constant 0 : index
    %c0_16 = arith.constant 0 : index
    %44 = vector.load %arg5[%c0_15, %c0_16] : memref<8x1xf32, #tpu.memory_space<vmem>>, vector<8x1xf32>
    %45 = tpu.concatenate %44, %44, %44, %44 in 0 : vector<8x1xf32>, vector<8x1xf32>, vector<8x1xf32>, vector<8x1xf32> -> vector<32x1xf32>
    %46 = vector.broadcast %43 : vector<32x1xf32> to vector<32x768xf32>
    %47 = arith.mulf %23, %46 : vector<32x768xf32>
    %48 = vector.broadcast %45 : vector<32x1xf32> to vector<32x768xf32>
    %49 = arith.addf %47, %48 : vector<32x768xf32>
    %cst_17 = arith.constant 0.000000e+00 : f32
    %50 = vector.broadcast %cst_17 : f32 to vector<32x768xf32>
    %51 = arith.maximumf %49, %50 : vector<32x768xf32>
    %c0_18 = arith.constant 0 : index
    %c0_19 = arith.constant 0 : index
    %52 = vector.load %arg6[%c0_18, %c0_19] : memref<32x768xf32, #tpu.memory_space<vmem>>, vector<32x768xf32>
    tpu.vector_store %arg6[%c0_18, %c0_19], %51 {strides = array<i32>} : memref<32x768xf32, #tpu.memory_space<vmem>>, vector<32x768xf32>,
    return
  }
  func.func @transform_0(%arg0: i32) -> (i32, i32) {
    %c0_i32 = arith.constant 0 : i32
    %c0_i32_0 = arith.constant 0 : i32
    %c0_i32_1 = arith.constant 0 : i32
    return %c0_i32, %c0_i32_0 : i32, i32
  }
  func.func @transform_1(%arg0: i32) -> (i32, i32) {
    %c0_i32 = arith.constant 0 : i32
    %c0_i32_0 = arith.constant 0 : i32
    %c0_i32_1 = arith.constant 0 : i32
    return %c0_i32, %c0_i32_0 : i32, i32
  }
  func.func @transform_2(%arg0: i32) -> (i32, i32) {
    %c0_i32 = arith.constant 0 : i32
    %c0_i32_0 = arith.constant 0 : i32
    %c0_i32_1 = arith.constant 0 : i32
    return %c0_i32, %c0_i32_0 : i32, i32
  }
  func.func @transform_3(%arg0: i32) -> (i32, i32) {
    %c0_i32 = arith.constant 0 : i32
    %c0_i32_0 = arith.constant 0 : i32
    %c0_i32_1 = arith.constant 0 : i32
    return %c0_i32, %c0_i32_0 : i32, i32
  }
  func.func @transform_4(%arg0: i32) -> (i32, i32) {
    %c0_i32 = arith.constant 0 : i32
    %c0_i32_0 = arith.constant 0 : i32
    %c0_i32_1 = arith.constant 0 : i32
    return %c0_i32, %c0_i32_0 : i32, i32
  }
  func.func @transform_5(%arg0: i32) -> (i32, i32) {
    %c0_i32 = arith.constant 0 : i32
    %c0_i32_0 = arith.constant 0 : i32
    %c0_i32_1 = arith.constant 0 : i32
    return %c0_i32, %c0_i32_0 : i32, i32
  }
}

</mosaic_0001>

<bundles_post_ra>
// kernel: tpu_custom_call.1
= control target key start
LH: loop header
LB: loop body
LE: loop exit
PB: predicated region body
PF: predicated region fallthrough
CT: control target
= control target key end

     0   :  { %s1210_s0 = inlined_call_operand.vmem [shape: bf16[4,896], index: 0, kind: input, shape index: {}]   ;;  %s1211_s1 = inlined_call_operand.vmem [shape: bf16[32,16], index: 1, kind: input, shape index: {}]   ;;  %s1212_s2 = inlined_call_operand.vmem [shape: f32[1,768], index: 2, kind: input, shape index: {}]   ;;  %s1213_s3 = inlined_call_operand.vmem [shape: f32[8,1], index: 3, kind: input, shape index: {}]   ;;  %s1214_s4 = inlined_call_operand.vmem [shape: f32[8,1], index: 4, kind: input, shape index: {}]   ;;  %s1215_s5 = inlined_call_operand.hbm [shape: f32[32,768], index: 5, kind: output, shape index: {}]  }
   0x1   :  { %v22_v0 = vld [vmem:[%s1210_s0] sm:$0xff] }
   0x2   :  { %10 = vsyncpa [#allocation3], 0  ;;  %27 = vst [vmem:[#allocation1] ss:$4 sm:$0xff] %v22_v0  ;;  %v23_v1 = vld [vmem:[%s1210_s0 + $0x8] sm:$0xf] }
   0x3   :  { %30 = vst [vmem:[#allocation1 + $0x20] ss:$4 sm:$0xff] %v23_v1  ;;  %v25_v6 = vld [vmem:[%s1210_s0 + $0x8] sm:$0x3f]  ;;  %s715_s24 = smov 127   ;;  %s716_s0 = smov 110  }
   0x4   :  { %s717_s25 = smov 109   ;;  %vm71_vm0 = vcmask 1039360   ;;  %vm156_vm1 = vcmask 1041408   ;;  %vm110_vm2 = vcmask 900096   ;;  %vm149_vm3 = vcmask 891904   ;;  %v790_v44 = vld [vmem:[%s1211_s1 + $0x8] sm:$0xff] }
   0x5   :  { %vm169_vm4 = vcmask 1043456   ;;  %vm182_vm5 = vcmask 1045504   ;;  %v673_v45 = vld [vmem:[%s1211_s1] sm:$0xff]  ;;  %vm215_vm6 = vcmask 130048   ;;  %s641_s11 = sshll.u32 %s1215_s5, 4  ;;  %s720_s12 = smov 768   ;;  %s642_s11 = int_to_ptr.hbm [resolvable:$true] %s641_s11 }
   0x6   :  { %s721_s13 = smov 48  }
   0x9   :  { %v758_v2 = vld.sshfl [vmem:[#allocation1] sm:$0xff pattern:$0x73625140]  ;;  %v760_v3 = vld.sshfl [vmem:[#allocation1 + $0x8] sm:$0xff pattern:$0x73625140] }
   0xa   :  { %v762_v4 = vld.sshfl [vmem:[#allocation1 + $0x10] sm:$0xff pattern:$0x73625140]  ;;  %v764_v5 = vld.sshfl [vmem:[#allocation1 + $0x18] sm:$0xff pattern:$0x73625140] }
   0xb   :  { %39 = vst [vmem:[#allocation1 + $0x1] ss:$4 sm:$0xff] %v22_v0  ;;  %v769_v7 = vld.sshfl [vmem:[#allocation1 + $0x20] sm:$0xff pattern:$0x73625140] }
   0xc   :  { %v771_v8 = vld.sshfl [vmem:[#allocation1 + $0x28] sm:$0xff pattern:$0x73625140] }
   0xd   :  { %42 = vst [vmem:[#allocation1 + $0x21] ss:$4 sm:$0xff] %v25_v6 }
  0x12   :  { %v43_v9 = vld.sshfl [vmem:[#allocation1] sm:$0xff pattern:$0x73625140]  ;;  %v45_v10 = vld.sshfl [vmem:[#allocation1 + $0x8] sm:$0xff pattern:$0x73625140] }
  0x13   :  { %57 = vrot.lane.b32.xlu0 %v43_v9, %s715_s24  ;;  %v47_v11 = vld.sshfl [vmem:[#allocation1 + $0x10] sm:$0xff pattern:$0x73625140]  ;;  %v49_v12 = vld.sshfl [vmem:[#allocation1 + $0x18] sm:$0xff pattern:$0x73625140] }
  0x14   :  { %79 = vst [vmem:[#allocation1 + $0x2] ss:$4 sm:$0xff] %v22_v0  ;;  %61 = vrot.lane.b32.xlu2 %v47_v11, %s715_s24  ;;  %v51_v13 = vld.sshfl [vmem:[#allocation1 + $0x20] sm:$0xff pattern:$0x73625140] }
  0x15   :  { %v53_v14 = vld.sshfl [vmem:[#allocation1 + $0x28] sm:$0xff pattern:$0x73625140]  ;;  %v55_v15 = vld.sshfl [vmem:[#allocation1 + $0x30] sm:$0xff pattern:$0x73625140] }
  0x16   :  { %81 = vst [vmem:[#allocation1 + $0x22] ss:$4 sm:$0xff] %v25_v6 }
  0x1b   :  { %59 = vrot.lane.b32.xlu0 %v45_v10, %s715_s24  ;;  %v86_v16 = vld.sshfl [vmem:[#allocation1 + $0x10] sm:$0xff pattern:$0x73625140]  ;;  %v88_v17 = vld.sshfl [vmem:[#allocation1 + $0x18] sm:$0xff pattern:$0x73625140] }
  0x1c   :  { %v82_v18 = vld.sshfl [vmem:[#allocation1] sm:$0xff pattern:$0x73625140]  ;;  %v84_v19 = vld.sshfl [vmem:[#allocation1 + $0x8] sm:$0xff pattern:$0x73625140] }
  0x1d   :  { %96 = vrot.lane.b32.xlu1 %v82_v18, %s716_s0  ;;  %118 = vst [vmem:[#allocation1 + $0x3] ss:$4 sm:$0xff] %v22_v0  ;;  %v90_v20 = vld.sshfl [vmem:[#allocation1 + $0x20] sm:$0xff pattern:$0x73625140] }
  0x1e   :  { %v92_v21 = vld.sshfl [vmem:[#allocation1 + $0x28] sm:$0xff pattern:$0x73625140]  ;;  %v94_v22 = vld.sshfl [vmem:[#allocation1 + $0x30] sm:$0xff pattern:$0x73625140] }
  0x1f   :  { %120 = vst [vmem:[#allocation1 + $0x23] ss:$4 sm:$0xff] %v25_v6 }
  0x24   :  { %v123_v23 = vld.sshfl [vmem:[#allocation1 + $0x8] sm:$0xff pattern:$0x73625140]  ;;  %v121_v24 = vld.sshfl [vmem:[#allocation1] sm:$0xff pattern:$0x73625140] }
  0x25   :  { %98 = vrot.lane.b32.xlu1 %v84_v19, %s716_s0  ;;  %137 = vrot.lane.b32.xlu0 %v123_v23, %s717_s25  ;;  %v125_v25 = vld.sshfl [vmem:[#allocation1 + $0x10] sm:$0xff pattern:$0x73625140]  ;;  %v127_v26 = vld.sshfl [vmem:[#allocation1 + $0x18] sm:$0xff pattern:$0x73625140] }
  0x26   :  { %135 = vrot.lane.b32.xlu2 %v121_v24, %s717_s25  ;;  %v129_v27 = vld.sshfl [vmem:[#allocation1 + $0x20] sm:$0xff pattern:$0x73625140]  ;;  %v131_v28 = vld.sshfl [vmem:[#allocation1 + $0x28] sm:$0xff pattern:$0x73625140] }
  0x27   :  { %v133_v29 = vld.sshfl [vmem:[#allocation1 + $0x30] sm:$0xff pattern:$0x73625140] }
  0x2d   :  { %100 = vrot.lane.b32.xlu1 %v86_v16, %s716_s0  ;;  %63 = vrot.lane.b32.xlu0 %v49_v12, %s715_s24 }
  0x2e   :  { %139 = vrot.lane.b32.xlu2 %v125_v25, %s717_s25 }
  0x35   :  { %102 = vrot.lane.b32.xlu1 %v88_v17, %s716_s0  ;;  %141 = vrot.lane.b32.xlu0 %v127_v26, %s717_s25 }
  0x36   :  { %65 = vrot.lane.b32.xlu2 %v51_v13, %s715_s24 }
  0x3d   :  { %104 = vrot.lane.b32.xlu1 %v90_v20, %s716_s0  ;;  %67 = vrot.lane.b32.xlu0 %v53_v14, %s715_s24 }
  0x3e   :  { %143 = vrot.lane.b32.xlu2 %v129_v27, %s717_s25 }
  0x45   :  { %106 = vrot.lane.b32.xlu1 %v92_v21, %s716_s0  ;;  %145 = vrot.lane.b32.xlu0 %v131_v28, %s717_s25 }
  0x46   :  { %69 = vrot.lane.b32.xlu2 %v55_v15, %s715_s24 }
  0x4d   :  { %108 = vrot.lane.b32.xlu1 %v94_v22, %s716_s0 }
  0x4e   :  { %147 = vrot.lane.b32.xlu2 %v133_v29, %s717_s25 }
  0x6e   :  { %v62_v30 = vpop.permute.xlu2 %61 }
  0x80   :  { %v136_v32 = vpop.permute.xlu2 %135 }
  0x85   :  { %v58_v31 = vpop.permute.xlu0 %57 }
  0x88   :  { %v140_v36 = vpop.permute.xlu2 %139 }
  0x8d   :  { %v60_v33 = vpop.permute.xlu0 %59 }
  0x8e   :  { %v72_v35 = vsel %vm71_vm0, %v58_v31, %v60_v33  ;;  %v73_v46 = vsel %vm71_vm0, %v60_v33, %v62_v30 }
  0x8f   :  { %v97_v34 = vpop.permute.xlu1 %96  ;;  %v158_v39 = vsel %vm156_vm1, %v758_v2, %v72_v35  ;;  %v160_v49 = vsel %vm156_vm1, %v760_v3, %v73_v46 }
  0x90   :  { %v66_v51 = vpop.permute.xlu2 %65 }
  0x97   :  { %v99_v37 = vpop.permute.xlu1 %98  ;;  %v138_v38 = vpop.permute.xlu0 %137 }
  0x98   :  { %v111_v40 = vsel %vm110_vm2, %v97_v34, %v99_v37  ;;  %v150_v41 = vsel %vm149_vm3, %v136_v32, %v138_v38  ;;  %v151_v52 = vsel %vm149_vm3, %v138_v38, %v140_v36  ;;  %v144_v63 = vpop.permute.xlu2 %143 }
  0x99   :  { %v171_v42 = vsel %vm169_vm4, %v158_v39, %v111_v40 }
  0x9a   :  { %v184_v43 = vsel %vm182_vm5, %v171_v42, %v150_v41 }
  0x9b   :  { %229 = vmatpush.bf16.msra.mxu0 %v184_v43  ;;  %675 = vmatpush.bf16.msra.mxu2 %v184_v43 }
  0x9e   :  { %662 = vmatmul.msk.bf16.vlgmr.msra.gmra.mxu2 %vm215_vm6, %v790_v44  ;;  %661 = vmatmul.msk.bf16.vlgmr.msra.gmra.mxu0 %vm215_vm6, %v673_v45 }
  0x9f   :  { %v101_v47 = vpop.permute.xlu1 %100  ;;  %v64_v48 = vpop.permute.xlu0 %63 }
  0xa0   :  { %v112_v50 = vsel %vm110_vm2, %v99_v37, %v101_v47  ;;  %v74_v55 = vsel %vm71_vm0, %v62_v30, %v64_v48  ;;  %v75_v0 = vsel %vm71_vm0, %v64_v48, %v66_v51  ;;  %v70_v11 = vpop.permute.xlu2 %69  ;;  %v336_v30 = vld [vmem:[%s1212_s2] sm:$0x3f] }
  0xa1   :  { %v173_v53 = vsel %vm169_vm4, %v160_v49, %v112_v50  ;;  %v162_v58 = vsel %vm156_vm1, %v762_v4, %v74_v55  ;;  %v164_v3 = vsel %vm156_vm1, %v764_v5, %v75_v0  ;;  %v867_v34 = vperm.slane %v336_v30, 0 }
  0xa2   :  { %v187_v54 = vsel %vm182_vm5, %v173_v53, %v151_v52  ;;  %v869_v35 = vperm.slane %v336_v30, 1  ;;  %v873_v37 = vperm.slane %v336_v30, 2  ;;  %v877_v39 = vperm.slane %v336_v30, 3 }
  0xa3   :  { %248 = vmatpush.bf16.msra.mxu1 %v187_v54  ;;  %676 = vmatpush.bf16.msra.mxu3 %v187_v54  ;;  %v893_v49 = vperm.slane %v336_v30, 5 }
  0xa6   :  { %664 = vmatmul.msk.bf16.vlgmr.msra.gmra.mxu3 %vm215_vm6, %v790_v44  ;;  %663 = vmatmul.msk.bf16.vlgmr.msra.gmra.mxu1 %vm215_vm6, %v673_v45 }
  0xa7   :  { %v103_v56 = vpop.permute.xlu1 %102  ;;  %v142_v57 = vpop.permute.xlu0 %141 }
  0xa8   :  { %v113_v59 = vsel %vm110_vm2, %v101_v47, %v103_v56  ;;  %v152_v60 = vsel %vm149_vm3, %v140_v36, %v142_v57  ;;  %v153_v6 = vsel %vm149_vm3, %v142_v57, %v144_v63  ;;  %v148_v20 = vpop.permute.xlu2 %147  ;;  %v891_v47 = vperm.slane %v336_v30, 4 }
  0xa9   :  { %v175_v61 = vsel %vm169_vm4, %v162_v58, %v113_v59 }
  0xaa   :  { %v190_v62 = vsel %vm182_vm5, %v175_v61, %v152_v60 }
  0xab   :  { %267 = vmatpush.bf16.msrb.mxu2 %v190_v62 }
  0xae   :  { %665 = vmatmul.msk.bf16.vlgmr.msrb.gmra.mxu2 %vm215_vm6, %v673_v45 }
  0xaf   :  { %v105_v1 = vpop.permute.xlu1 %104  ;;  %v68_v2 = vpop.permute.xlu0 %67 }
  0xb0   :  { %v114_v4 = vsel %vm110_vm2, %v103_v56, %v105_v1  ;;  %v76_v12 = vsel %vm71_vm0, %v66_v51, %v68_v2  ;;  %v77_v19 = vsel %vm71_vm0, %v68_v2, %v70_v11 }
  0xb1   :  { %v177_v9 = vsel %vm169_vm4, %v164_v3, %v114_v4  ;;  %v166_v15 = vsel %vm156_vm1, %v769_v7, %v76_v12  ;;  %v168_v7 = vsel %vm156_vm1, %v771_v8, %v77_v19 }
  0xb2   :  { %v193_v10 = vsel %vm182_vm5, %v177_v9, %v153_v6 }
  0xb3   :  { %286 = vmatpush.bf16.msrb.mxu3 %v193_v10 }
  0xb6   :  { %667 = vmatmul.msk.bf16.vlgmr.msrb.gmra.mxu3 %vm215_vm6, %v673_v45 }
  0xb7   :  { %v107_v13 = vpop.permute.xlu1 %106  ;;  %v146_v14 = vpop.permute.xlu0 %145 }
  0xb8   :  { %v115_v5 = vsel %vm110_vm2, %v105_v1, %v107_v13  ;;  %v154_v16 = vsel %vm149_vm3, %v144_v63, %v146_v14  ;;  %v155_v23 = vsel %vm149_vm3, %v146_v14, %v148_v20 }
  0xb9   :  { %v179_v17 = vsel %vm169_vm4, %v166_v15, %v115_v5 }
  0xba   :  { %v196_v18 = vsel %vm182_vm5, %v179_v17, %v154_v16 }
  0xbb   :  { %305 = vmatpush.bf16.msrb.mxu0 %v196_v18 }
  0xbe   :  { %666 = vmatmul.msk.bf16.gmra.mxu2 %vm215_vm6, %v790_v44  ;;  %669 = vmatmul.msk.bf16.vlgmr.msrb.gmra.mxu0 %vm215_vm6, %v673_v45 }
  0xbf   :  { %v109_v21 = vpop.permute.xlu1 %108 }
  0xc0   :  { %v116_v22 = vsel %vm110_vm2, %v107_v13, %v109_v21 }
  0xc1   :  { %v181_v24 = vsel %vm169_vm4, %v168_v7, %v116_v22 }
  0xc2   :  { %v199_v25 = vsel %vm182_vm5, %v181_v24, %v155_v23 }
  0xc3   :  { %324 = vmatpush.bf16.msrb.mxu1 %v199_v25 }
  0xc6   :  { %668 = vmatmul.msk.bf16.gmra.mxu3 %vm215_vm6, %v790_v44  ;;  %671 = vmatmul.msk.bf16.vlgmr.msrb.gmra.mxu1 %vm215_vm6, %v673_v45 }
  0xce   :  { %670 = vmatmul.msk.bf16.gmra.mxu0 %vm215_vm6, %v790_v44 }
  0xd6   :  { %672 = vmatmul.msk.bf16.gmra.mxu1 %vm215_vm6, %v790_v44 }
 0x11b   :  { %v850_v26 = vpop.f32.mrf.mxu0 }
 0x11c   :  { %v350_v36 = vmul.f32 %v867_v34, %v850_v26 }
 0x121   :  { %v848_v8 = vpop.f32.mrf.mxu2 }
 0x122   :  { %v362_v1 = vmul.f32 %v867_v34, %v848_v8 }
 0x123   :  { %v856_v29 = vpop.f32.mrf.mxu1  ;;  %v865_v33 = vpop.f32.mrf.mxu0 }
 0x124   :  { %v351_v38 = vmul.f32 %v869_v35, %v856_v29  ;;  %v356_v50 = vmul.f32 %v867_v34, %v865_v33 }
 0x126   :  { %v374_v42 = vadd.f32 %v351_v38, %v350_v36 }
 0x129   :  { %v852_v27 = vpop.f32.mrf.mxu2  ;;  %v854_v28 = vpop.f32.mrf.mxu3 }
 0x12a   :  { %v363_v2 = vmul.f32 %v869_v35, %v854_v28  ;;  %v368_v7 = vmul.f32 %v867_v34, %v852_v27 }
 0x12b   :  { %v883_v43 = vpop.f32.mrf.mxu1 }
 0x12c   :  { %v357_v52 = vmul.f32 %v869_v35, %v883_v43  ;;  %v388_v12 = vadd.f32 %v363_v2, %v362_v1 }
 0x12e   :  { %v381_v58 = vadd.f32 %v357_v52, %v356_v50 }
 0x131   :  { %v861_v31 = vpop.f32.mrf.mxu3  ;;  %v863_v32 = vpop.f32.mrf.mxu2 }
 0x132   :  { %v352_v41 = vmul.f32 %v873_v37, %v863_v32  ;;  %v369_v18 = vmul.f32 %v869_v35, %v861_v31 }
 0x134   :  { %v375_v48 = vadd.f32 %v374_v42, %v352_v41  ;;  %v395_v24 = vadd.f32 %v369_v18, %v368_v7 }
 0x139   :  { %v879_v40 = vpop.f32.mrf.mxu3  ;;  %v885_v44 = vpop.f32.mrf.mxu2 }
 0x13a   :  { %v353_v46 = vmul.f32 %v877_v39, %v879_v40  ;;  %v358_v55 = vmul.f32 %v873_v37, %v885_v44 }
 0x13b   :  { %v887_v45 = vpop.f32.mrf.mxu0 }
 0x13c   :  { %v376_v51 = vadd.f32 %v375_v48, %v353_v46  ;;  %v354_v53 = vmul.f32 %v891_v47, %v887_v45  ;;  %v382_v63 = vadd.f32 %v381_v58, %v358_v55  ;;  %v718_v55 = vmov 0  }
 0x13d   :  { %684 = vset.pattern.permute.xlu0 %v718_v55  ;;  %685 = vset.pattern.permute.xlu1 %v718_v55 }
 0x13e   :  { %v377_v61 = vadd.f32 %v376_v51, %v354_v53  ;;  %686 = vset.pattern.permute.xlu2 %v718_v55 }
 0x141   :  { %v901_v54 = vpop.f32.mrf.mxu3  ;;  %v913_v62 = vpop.f32.mrf.mxu2 }
 0x142   :  { %v359_v59 = vmul.f32 %v877_v39, %v901_v54  ;;  %v364_v9 = vmul.f32 %v873_v37, %v913_v62 }
 0x143   :  { %v905_v56 = vpop.f32.mrf.mxu0  ;;  %v907_v57 = vpop.f32.mrf.mxu1 }
 0x144   :  { %v355_v60 = vmul.f32 %v893_v49, %v907_v57  ;;  %v383_v3 = vadd.f32 %v382_v63, %v359_v59  ;;  %v360_v4 = vmul.f32 %v891_v47, %v905_v56  ;;  %v389_v5 = vadd.f32 %v388_v12, %v364_v9 }
 0x146   :  { %v378_v0 = vadd.f32 %v377_v61, %v355_v60  ;;  %v384_v15 = vadd.f32 %v383_v3, %v360_v4 }
 0x148   :  { %379 = vadd.xlane.f32.xlu0 %v378_v0 }
 0x149   :  { %v921_v6 = vpop.f32.mrf.mxu3  ;;  %v930_v17 = vpop.f32.mrf.mxu2 }
 0x14a   :  { %v365_v13 = vmul.f32 %v877_v39, %v921_v6  ;;  %v370_v22 = vmul.f32 %v873_v37, %v930_v17 }
 0x14b   :  { %v925_v10 = vpop.f32.mrf.mxu0  ;;  %v328_v11 = vpop.f32.mrf.mxu1 }
 0x14c   :  { %v361_v14 = vmul.f32 %v893_v49, %v328_v11  ;;  %v390_v19 = vadd.f32 %v389_v5, %v365_v13  ;;  %v366_v20 = vmul.f32 %v891_v47, %v925_v10  ;;  %v396_v41 = vadd.f32 %v395_v24, %v370_v22 }
 0x14e   :  { %v385_v16 = vadd.f32 %v384_v15, %v361_v14  ;;  %v391_v36 = vadd.f32 %v390_v19, %v366_v20 }
 0x150   :  { %386 = vadd.xlane.f32.xlu1 %v385_v16 }
 0x151   :  { %v936_v21 = vpop.f32.mrf.mxu3 }
 0x152   :  { %v371_v25 = vmul.f32 %v877_v39, %v936_v21 }
 0x153   :  { %v942_v23 = vpop.f32.mrf.mxu1  ;;  %v948_v38 = vpop.f32.mrf.mxu0 }
 0x154   :  { %v367_v30 = vmul.f32 %v893_v49, %v942_v23  ;;  %v397_v46 = vadd.f32 %v396_v41, %v371_v25  ;;  %v372_v48 = vmul.f32 %v891_v47, %v948_v38 }
 0x156   :  { %v392_v42 = vadd.f32 %v391_v36, %v367_v30  ;;  %v398_v51 = vadd.f32 %v397_v46, %v372_v48 }
 0x158   :  { %393 = vadd.xlane.f32.xlu2 %v392_v42 }
 0x15b   :  { %v952_v50 = vpop.f32.mrf.mxu1 }
 0x15c   :  { %v373_v52 = vmul.f32 %v893_v49, %v952_v50 }
 0x15e   :  { %v399_v53 = vadd.f32 %v398_v51, %v373_v52 }
 0x160   :  { %400 = vadd.xlane.f32.xlu2 %v399_v53 }
 0x1bb   :  { %v380_v60 = vpop.xlane.xlu0 %379 }
 0x1c3   :  { %v387_v59 = vpop.xlane.xlu1 %386 }
 0x1c4   :  { %v402_v61 = vadd.f32 %v387_v59, %v380_v60 }
 0x1cb   :  { %v394_v58 = vpop.xlane.xlu2 %393 }
 0x1cc   :  { %v403_v63 = vadd.f32 %v402_v61, %v394_v58 }
 0x1d3   :  { %v401_v0 = vpop.xlane.xlu2 %400 }
 0x1d4   :  { %v404_v1 = vadd.f32 %v403_v63, %v401_v0 }
 0x1d6   :  { %v405_v2 = vmul.f32 0.00043252597, %v404_v1 }
 0x1d8   :  { %408 = vperm.xlu0 %684, %v405_v2  }
 0x24a   :  { %v956_v3 = vpop.permute.xlu0 %408 }
 0x24b   :  { %v960_v4 = vsub.f32 %v865_v33, %v956_v3  ;;  %v964_v9 = vsub.f32 %v883_v43, %v956_v3  ;;  %v968_v12 = vsub.f32 %v885_v44, %v956_v3  ;;  %v972_v13 = vsub.f32 %v901_v54, %v956_v3 }
 0x24c   :  { %v976_v14 = vsub.f32 %v905_v56, %v956_v3  ;;  %v980_v33 = vsub.f32 %v850_v26, %v956_v3  ;;  %v990_v54 = vsub.f32 %v856_v29, %v956_v3  ;;  %v993_v56 = vsub.f32 %v328_v11, %v956_v3 }
 0x24d   :  { %v441_v43 = vmul.f32 %v960_v4, %v960_v4  ;;  %v442_v15 = vmul.f32 %v964_v9, %v964_v9  ;;  %v443_v44 = vmul.f32 %v968_v12, %v968_v12  ;;  %v444_v26 = vmul.f32 %v972_v13, %v972_v13 }
 0x24e   :  { %v445_v5 = vmul.f32 %v976_v14, %v976_v14  ;;  %v1001_v16 = vsub.f32 %v863_v32, %v956_v3  ;;  %v1007_v29 = vsub.f32 %v879_v40, %v956_v3  ;;  %v1012_v20 = vsub.f32 %v887_v45, %v956_v3 }
 0x24f   :  { %v465_v18 = vmul.f32 %v441_v43, %v867_v34  ;;  %v466_v19 = vmul.f32 %v442_v15, %v869_v35  ;;  %v467_v11 = vmul.f32 %v443_v44, %v873_v37  ;;  %v1016_v7 = vsub.f32 %v907_v57, %v956_v3 }
 0x250   :  { %v435_v22 = vmul.f32 %v980_v33, %v980_v33  ;;  %v436_v24 = vmul.f32 %v990_v54, %v990_v54  ;;  %v437_v40 = vmul.f32 %v1001_v16, %v1001_v16  ;;  %v446_v25 = vmul.f32 %v993_v56, %v993_v56 }
 0x251   :  { %v490_v32 = vadd.f32 %v466_v19, %v465_v18  ;;  %v468_v45 = vmul.f32 %v444_v26, %v877_v39  ;;  %v469_v30 = vmul.f32 %v445_v5, %v891_v47  ;;  %v1030_v57 = vsub.f32 %v852_v27, %v956_v3 }
 0x252   :  { %v438_v41 = vmul.f32 %v1007_v29, %v1007_v29  ;;  %v459_v42 = vmul.f32 %v435_v22, %v867_v34  ;;  %v460_v46 = vmul.f32 %v436_v24, %v869_v35  ;;  %v439_v48 = vmul.f32 %v1012_v20, %v1012_v20 }
 0x253   :  { %v491_v36 = vadd.f32 %v490_v32, %v467_v11  ;;  %v440_v51 = vmul.f32 %v1016_v7, %v1016_v7  ;;  %v461_v52 = vmul.f32 %v437_v40, %v873_v37  ;;  %v1043_v27 = vsub.f32 %v861_v31, %v956_v3 }
 0x254   :  { %v483_v55 = vadd.f32 %v460_v46, %v459_v42  ;;  %v1047_v58 = vsub.f32 %v930_v17, %v956_v3  ;;  %v1051_v59 = vsub.f32 %v936_v21, %v956_v3  ;;  %v470_v60 = vmul.f32 %v446_v25, %v893_v49 }
 0x255   :  { %v492_v53 = vadd.f32 %v491_v36, %v468_v45  ;;  %v1056_v61 = vsub.f32 %v948_v38, %v956_v3  ;;  %v453_v31 = vmul.f32 %v1030_v57, %v1030_v57  ;;  %v454_v63 = vmul.f32 %v1043_v27, %v1043_v27 }
 0x256   :  { %v462_v17 = vmul.f32 %v438_v41, %v877_v39  ;;  %v484_v1 = vadd.f32 %v483_v55, %v461_v52  ;;  %v455_v21 = vmul.f32 %v1047_v58, %v1047_v58  ;;  %v1067_v2 = vsub.f32 %v952_v50, %v956_v3 }
 0x257   :  { %v493_v0 = vadd.f32 %v492_v53, %v469_v30  ;;  %v456_v38 = vmul.f32 %v1051_v59, %v1051_v59  ;;  %v477_v43 = vmul.f32 %v453_v31, %v867_v34  ;;  %v478_v15 = vmul.f32 %v454_v63, %v869_v35 }
 0x258   :  { %v463_v26 = vmul.f32 %v439_v48, %v891_v47  ;;  %v464_v5 = vmul.f32 %v440_v51, %v893_v49  ;;  %v485_v18 = vadd.f32 %v484_v1, %v462_v17  ;;  %v457_v19 = vmul.f32 %v1056_v61, %v1056_v61 }
 0x259   :  { %v494_v44 = vadd.f32 %v493_v0, %v470_v60  ;;  %v479_v11 = vmul.f32 %v455_v21, %v873_v37  ;;  %v504_v50 = vadd.f32 %v478_v15, %v477_v43  ;;  %v1080_v32 = vsub.f32 %v848_v8, %v956_v3 }
 0x25a   :  { %v486_v22 = vadd.f32 %v485_v18, %v463_v26  ;;  %v1084_v24 = vsub.f32 %v854_v28, %v956_v3  ;;  %v1088_v40 = vsub.f32 %v913_v62, %v956_v3  ;;  %v1092_v25 = vsub.f32 %v921_v6, %v956_v3 }
 0x25b   :  { %495 = vadd.xlane.f32.xlu2 %v494_v44  ;;  %v458_v45 = vmul.f32 %v1067_v2, %v1067_v2  ;;  %v480_v8 = vmul.f32 %v456_v38, %v877_v39  ;;  %v505_v30 = vadd.f32 %v504_v50, %v479_v11  ;;  %v447_v36 = vmul.f32 %v1080_v32, %v1080_v32 }
 0x25c   :  { %v487_v41 = vadd.f32 %v486_v22, %v464_v5  ;;  %v1101_v28 = vsub.f32 %v925_v10, %v956_v3  ;;  %v448_v62 = vmul.f32 %v1084_v24, %v1084_v24  ;;  %v449_v6 = vmul.f32 %v1088_v40, %v1088_v40 }
 0x25d   :  { %v481_v42 = vmul.f32 %v457_v19, %v891_v47  ;;  %v506_v46 = vadd.f32 %v505_v30, %v480_v8  ;;  %v471_v48 = vmul.f32 %v447_v36, %v867_v34  ;;  %v1111_v51 = vsub.f32 %v942_v23, %v956_v3  ;;  %v515_v8 = vld [vmem:[%s1213_s3] sm:$0xff]  ;;  %s719_s3 = smov [#allocation2]  }
 0x25e   :  { %488 = vadd.xlane.f32.xlu1 %v487_v41  ;;  %v450_v10 = vmul.f32 %v1092_v25, %v1092_v25  ;;  %v472_v52 = vmul.f32 %v448_v62, %v869_v35  ;;  %v482_v53 = vmul.f32 %v458_v45, %v893_v49  ;;  %v451_v60 = vmul.f32 %v1101_v28, %v1101_v28 }
 0x25f   :  { %v507_v55 = vadd.f32 %v506_v46, %v481_v42  ;;  %v473_v31 = vmul.f32 %v449_v6, %v873_v37  ;;  %v452_v0 = vmul.f32 %v1111_v51, %v1111_v51  ;;  %v528_v37 = vld [vmem:[%s1214_s4] sm:$0xff]  ;;  %s639_s4 = sshll.u32 %s719_s3, 4  ;;  %s640_s4 = int_to_ptr.vmem [resolvable:$true] %s639_s4 }
 0x260   :  { %v497_v63 = vadd.f32 %v472_v52, %v471_v48  ;;  %v474_v23 = vmul.f32 %v450_v10, %v877_v39  ;;  %v475_v17 = vmul.f32 %v451_v60, %v891_v47 }
 0x261   :  { %v508_v34 = vadd.f32 %v507_v55, %v482_v53  ;;  %v476_v1 = vmul.f32 %v452_v0, %v893_v49 }
 0x262   :  { %v498_v3 = vadd.f32 %v497_v63, %v473_v31 }
 0x263   :  { %509 = vadd.xlane.f32.xlu2 %v508_v34 }
 0x264   :  { %v499_v35 = vadd.f32 %v498_v3, %v474_v23 }
 0x266   :  { %v500_v21 = vadd.f32 %v499_v35, %v475_v17 }
 0x268   :  { %v501_v38 = vadd.f32 %v500_v21, %v476_v1 }
 0x26a   :  { %502 = vadd.xlane.f32.xlu1 %v501_v38 }
 0x27b   :  { %560 = vperm.xlu2 %686, %v528_v37  }
 0x2ce   :  { %v496_v15 = vpop.xlane.xlu2 %495 }
 0x2d1   :  { %v489_v43 = vpop.xlane.xlu1 %488 }
 0x2d2   :  { %v511_v44 = vadd.f32 %v496_v15, %v489_v43 }
 0x2d6   :  { %v510_v5 = vpop.xlane.xlu2 %509 }
 0x2dd   :  { %v503_v26 = vpop.xlane.xlu1 %502 }
 0x2de   :  { %v512_v39 = vadd.f32 %v511_v44, %v503_v26  ;;  %v1141_v10 = vpop.permute.xlu2 %560 }
 0x2e0   :  { %v513_v18 = vadd.f32 %v512_v39, %v510_v5 }
 0x2e2   :  { %v514_v19 = vmul.f32 0.00043252597, %v513_v18 }
 0x2e4   :  { %v516_v47 = vadd.f32 1e-05, %v514_v19 }
 0x2e6   :  { %687 = vrsqrt.f32 %v516_v47  ;;  %vm523_vm8 = vweird.f32 %v516_v47 }
 0x2ec   :  { %v688_v11 = vpop.eup %687 }
 0x2ed   :  { %v518_v49 = vmul.f32 %v688_v11, %v516_v47  ;;  %vm524_vm7 = vweird.f32 %v688_v11 }
 0x2ee   :  { %vm525_vm9 = vmor %vm523_vm8, %vm524_vm7 }
 0x2ef   :  { %v519_v50 = vmul.f32 %v688_v11, %v518_v49 }
 0x2f1   :  { %v520_v22 = vmul.f32 0.5, %v519_v50 }
 0x2f3   :  { %v521_v45 = vsub.f32 1.5, %v520_v22 }
 0x2f5   :  { %v522_v30 = vmul.f32 %v688_v11, %v521_v45 }
 0x2f7   :  { %v526_v36 = vsel %vm525_vm9, %v688_v11, %v522_v30 }
 0x2f8   :  { %v527_v41 = vmul.f32 %v526_v36, %v515_v8 }
 0x2fa   :  { %531 = vperm.xlu1 %685, %v527_v41  }
 0x36c   :  { %v1131_v62 = vpop.permute.xlu1 %531 }
 0x36d   :  { %v534_v6 = vmul.f32 %v1131_v62, %v980_v33  ;;  %v535_v42 = vmul.f32 %v1131_v62, %v990_v54  ;;  %v536_v46 = vmul.f32 %v1131_v62, %v1001_v16  ;;  %v537_v48 = vmul.f32 %v1131_v62, %v1007_v29 }
 0x36e   :  { %v538_v52 = vmul.f32 %v1131_v62, %v1012_v20  ;;  %v539_v53 = vmul.f32 %v1131_v62, %v1016_v7  ;;  %v540_v33 = vmul.f32 %v1131_v62, %v960_v4  ;;  %v541_v29 = vmul.f32 %v1131_v62, %v964_v9 }
 0x36f   :  { %v563_v55 = vadd.f32 %v1141_v10, %v534_v6  ;;  %v564_v54 = vadd.f32 %v1141_v10, %v535_v42  ;;  %v565_v16 = vadd.f32 %v1141_v10, %v536_v46  ;;  %v566_v60 = vadd.f32 %v1141_v10, %v537_v48 }
 0x370   :  { %v542_v20 = vmul.f32 %v1131_v62, %v968_v12  ;;  %v567_v31 = vadd.f32 %v1141_v10, %v538_v52  ;;  %v543_v7 = vmul.f32 %v1131_v62, %v972_v13  ;;  %v544_v4 = vmul.f32 %v1131_v62, %v976_v14 }
 0x371   :  { %v568_v63 = vadd.f32 %v1141_v10, %v539_v53  ;;  %v569_v34 = vadd.f32 %v1141_v10, %v540_v33  ;;  %v587_v0 = vmax.f32 %v563_v55, 0.0  ;;  %v588_v23 = vmax.f32 %v564_v54, 0.0 }
 0x372   :  { %v589_v9 = vmax.f32 %v565_v16, 0.0  ;;  %v545_v3 = vmul.f32 %v1131_v62, %v993_v56  ;;  %v570_v12 = vadd.f32 %v1141_v10, %v541_v29  ;;  %v590_v17 = vmax.f32 %v566_v60, 0.0 }
 0x373   :  { %v546_v35 = vmul.f32 %v1131_v62, %v1080_v32  ;;  %v571_v13 = vadd.f32 %v1141_v10, %v542_v20  ;;  %v591_v1 = vmax.f32 %v567_v31, 0.0  ;;  %611 = vst [vmem:[#allocation2] sm:$0xff] %v587_v0  ;;  %v547_v14 = vmul.f32 %v1131_v62, %v1084_v24 }
 0x374   :  { %v572_v21 = vadd.f32 %v1141_v10, %v543_v7  ;;  %v592_v38 = vmax.f32 %v568_v63, 0.0  ;;  %612 = vst [vmem:[#allocation2 + $0x8] sm:$0xff] %v588_v23  ;;  %v548_v56 = vmul.f32 %v1131_v62, %v1088_v40  ;;  %v573_v43 = vadd.f32 %v1141_v10, %v544_v4 }
 0x375   :  { %v593_v15 = vmax.f32 %v569_v34, 0.0  ;;  %613 = vst [vmem:[#allocation2 + $0x10] sm:$0xff] %v589_v9  ;;  %v549_v32 = vmul.f32 %v1131_v62, %v1092_v25  ;;  %v574_v37 = vadd.f32 %v1141_v10, %v545_v3  ;;  %v594_v44 = vmax.f32 %v570_v12, 0.0 }
 0x376   :  { %614 = vst [vmem:[#allocation2 + $0x18] sm:$0xff] %v590_v17  ;;  %v550_v24 = vmul.f32 %v1131_v62, %v1101_v28  ;;  %v575_v26 = vadd.f32 %v1141_v10, %v546_v35  ;;  %v595_v39 = vmax.f32 %v571_v13, 0.0  ;;  %v551_v40 = vmul.f32 %v1131_v62, %v1111_v51 }
 0x377   :  { %615 = vst [vmem:[#allocation2 + $0x20] sm:$0xff] %v591_v1  ;;  %v576_v5 = vadd.f32 %v1141_v10, %v547_v14  ;;  %v596_v18 = vmax.f32 %v572_v21, 0.0  ;;  %v552_v25 = vmul.f32 %v1131_v62, %v1030_v57  ;;  %v577_v19 = vadd.f32 %v1141_v10, %v548_v56 }
 0x378   :  { %616 = vst [vmem:[#allocation2 + $0x28] sm:$0xff] %v592_v38  ;;  %v597_v47 = vmax.f32 %v573_v43, 0.0  ;;  %v553_v28 = vmul.f32 %v1131_v62, %v1043_v27  ;;  %v578_v11 = vadd.f32 %v1141_v10, %v549_v32  ;;  %v598_v49 = vmax.f32 %v574_v37, 0.0 }
 0x379   :  { %617 = vst [vmem:[#allocation2 + $0x30] sm:$0xff] %v593_v15  ;;  %v554_v51 = vmul.f32 %v1131_v62, %v1047_v58  ;;  %v579_v50 = vadd.f32 %v1141_v10, %v550_v24  ;;  %v599_v22 = vmax.f32 %v575_v26, 0.0  ;;  %v555_v57 = vmul.f32 %v1131_v62, %v1051_v59 }
 0x37a   :  { %618 = vst [vmem:[#allocation2 + $0x38] sm:$0xff] %v594_v44  ;;  %v580_v45 = vadd.f32 %v1141_v10, %v551_v40  ;;  %v600_v8 = vmax.f32 %v576_v5, 0.0  ;;  %v556_v27 = vmul.f32 %v1131_v62, %v1056_v61  ;;  %v581_v30 = vadd.f32 %v1141_v10, %v552_v25 }
 0x37b   :  { %619 = vst [vmem:[#allocation2 + $0x40] sm:$0xff] %v595_v39  ;;  %v601_v36 = vmax.f32 %v577_v19, 0.0  ;;  %v557_v58 = vmul.f32 %v1131_v62, %v1067_v2  ;;  %v582_v41 = vadd.f32 %v1141_v10, %v553_v28  ;;  %v602_v6 = vmax.f32 %v578_v11, 0.0 }
 0x37c   :  { %620 = vst [vmem:[#allocation2 + $0x48] sm:$0xff] %v596_v18  ;;  %v583_v59 = vadd.f32 %v1141_v10, %v554_v51  ;;  %v603_v42 = vmax.f32 %v579_v50, 0.0  ;;  %v584_v46 = vadd.f32 %v1141_v10, %v555_v57  ;;  %v604_v48 = vmax.f32 %v580_v45, 0.0 }
 0x37d   :  { %621 = vst [vmem:[#allocation2 + $0x50] sm:$0xff] %v597_v47  ;;  %v585_v61 = vadd.f32 %v1141_v10, %v556_v27  ;;  %v605_v52 = vmax.f32 %v581_v30, 0.0  ;;  %v586_v53 = vadd.f32 %v1141_v10, %v557_v58  ;;  %v606_v33 = vmax.f32 %v582_v41, 0.0 }
 0x37e   :  { %622 = vst [vmem:[#allocation2 + $0x58] sm:$0xff] %v598_v49  ;;  %v607_v2 = vmax.f32 %v583_v59, 0.0  ;;  %v608_v62 = vmax.f32 %v584_v46, 0.0 }
 0x37f   :  { %623 = vst [vmem:[#allocation2 + $0x60] sm:$0xff] %v599_v22  ;;  %v609_v55 = vmax.f32 %v585_v61, 0.0  ;;  %v610_v54 = vmax.f32 %v586_v53, 0.0 }
 0x380   :  { %624 = vst [vmem:[#allocation2 + $0x68] sm:$0xff] %v600_v8 }
 0x381   :  { %625 = vst [vmem:[#allocation2 + $0x70] sm:$0xff] %v601_v36 }
 0x382   :  { %626 = vst [vmem:[#allocation2 + $0x78] sm:$0xff] %v602_v6 }
 0x383   :  { %627 = vst [vmem:[#allocation2 + $0x80] sm:$0xff] %v603_v42 }
 0x384   :  { %628 = vst [vmem:[#allocation2 + $0x88] sm:$0xff] %v604_v48 }
 0x385   :  { %629 = vst [vmem:[#allocation2 + $0x90] sm:$0xff] %v605_v52 }
 0x386   :  { %630 = vst [vmem:[#allocation2 + $0x98] sm:$0xff] %v606_v33 }
 0x387   :  { %631 = vst [vmem:[#allocation2 + $0xa0] sm:$0xff] %v607_v2 }
 0x388   :  { %632 = vst [vmem:[#allocation2 + $0xa8] sm:$0xff] %v608_v62 }
 0x389   :  { %633 = vst [vmem:[#allocation2 + $0xb0] sm:$0xff] %v609_v55 }
 0x38a   :  { %634 = vst [vmem:[#allocation2 + $0xb8] sm:$0xff] %v610_v54 }
 0x38b   :  { %647 = dma.vmem_to_hbm [thread:$0]  %s640_s4, 3072, %s642_s11, [#allocation3], %s720_s12, %s720_s12, %s721_s13  }
 0x38c   :  { %713 = dma.done.wait [#allocation3], 3072  }
 0x38d   :  { %714 = vsyncadd [#allocation3], 4294964224 }
 0x38e   :  { %652 = vsyncpa [#allocation3], 1 }

</bundles_post_ra>
